<compile_context>
chip_gen: v7x
topology: tpu7x:2x2x1
jax: 0.10.0
libtpu: 0.0.40
codegen_flags: <defaults>
</compile_context>

<pallas_src>
import jax
import jax.numpy as jnp
from jax.experimental import pallas as pl
from jax.experimental.pallas import tpu as pltpu

EPS = 1e-5


def _round_up(n, m):
    return (n + m - 1) // m * m


def irisnet_kernel(x_ref, w1_ref, b1_ref, w2_ref, b2_ref, w3t_ref, b3_ref, o_ref):
    x = x_ref[...]                                                # (TB, 4) f32

    # layer1: Linear(4, 32) [BN1 folded] + ReLU   (Dropout: identity in eval)
    # NOTE: K=4/N=32 leaves the MXU mostly idle; this kernel is DMA-bound so
    # the MXU path is kept for simplicity (a 4-FMA VPU path is equivalent).
    h = jnp.dot(x, w1_ref[...], preferred_element_type=jnp.float32) + b1_ref[...]
    h = jnp.maximum(h, 0.0)

    # layer2: Linear(32, 16) [BN2 folded] + ReLU  (Dropout: identity in eval)
    h = jnp.dot(h, w2_ref[...], preferred_element_type=jnp.float32) + b2_ref[...]
    h = jnp.maximum(h, 0.0)

    # layer3: Linear(16, 3), emitted lane-dense as (3, TB):
    #   out_t = w3^T (3,16) . h^T (16,TB)  -- NT contraction, no explicit transpose.
    out_t = jax.lax.dot_general(
        w3t_ref[...], h,
        dimension_numbers=(((1,), (1,)), ((), ())),
        preferred_element_type=jnp.float32,
    )
    o_ref[...] = out_t + b3_ref[...]                              # (3, TB) + (3, 1)


def _fold_batchnorm(p):
    """Fold eval-mode BatchNorm1d into the preceding Linear layers."""
    s1 = p["g1"] * jax.lax.rsqrt(p["v1"] + EPS)                   # (1, 32)
    s2 = p["g2"] * jax.lax.rsqrt(p["v2"] + EPS)                   # (1, 16)
    w1 = p["w1"] * s1                                             # (4, 32)
    b1 = (p["b1"] - p["m1"]) * s1 + p["be1"]                      # (1, 32)
    w2 = p["w2"] * s2                                             # (32, 16)
    b2 = (p["b2"] - p["m2"]) * s2 + p["be2"]                      # (1, 16)
    w3t = p["w3"].T                                               # (3, 16)
    b3 = p["b3"].T                                                # (3, 1)
    return w1, b1, w2, b2, w3t, b3


def irisnet_forward(x, params, block_b=2048):
    """x: (B, 4) float32 -> (B, 3) float32 (eval-mode forward)."""
    B = x.shape[0]
    TB = min(block_b, _round_up(B, 8))
    if TB < _round_up(B, 8):
        # Multi-tile grid: output tile (3, TB) needs TB to be lane-aligned.
        TB = _round_up(TB, 128)
    B_pad = _round_up(B, TB)
    if B_pad != B:
        x = jnp.pad(x, ((0, B_pad - B), (0, 0)))

    w1, b1, w2, b2, w3t, b3 = _fold_batchnorm(params)

    def const(shape):
        # Full-array block with a constant index_map: fetched once, resident.
        return pl.BlockSpec(shape, lambda i: (0, 0))

    out_t = pl.pallas_call(
        irisnet_kernel,
        out_shape=jax.ShapeDtypeStruct((3, B_pad), jnp.float32),
        grid=(B_pad // TB,),
        in_specs=[
            pl.BlockSpec((TB, 4), lambda i: (i, 0)),   # stream batch tiles of x
            const((4, 32)), const((1, 32)),            # layer1 (BN folded)
            const((32, 16)), const((1, 16)),           # layer2 (BN folded)
            const((3, 16)), const((3, 1)),             # layer3 (transposed)
        ],
        out_specs=pl.BlockSpec((3, TB), lambda i: (0, i)),
        compiler_params=pltpu.CompilerParams(
            dimension_semantics=("parallel",),         # shard batch tiles across TCs (v7x)
        ),
    )(x, w1, b1, w2, b2, w3t, b3)

    # Undo the lane-dense layout + padding; public API stays (B, 3).
    return out_t[:, :B].T


def init_params(key):
    """Deterministic parameter init matching the PyTorch module's shapes.

    Linear: uniform(-1/sqrt(fan_in), 1/sqrt(fan_in)) (PyTorch default),
    weights stored as (in, out). BatchNorm: weight=1, bias=0,
    running_mean=0, running_var=1 (PyTorch default).
    """
    ks = jax.random.split(key, 6)

    def lin(kw, kb, fan_in, fan_out):
        bound = 1.0 / jnp.sqrt(fan_in)
        w = jax.random.uniform(kw, (fan_in, fan_out), jnp.float32, -bound, bound)
        b = jax.random.uniform(kb, (1, fan_out), jnp.float32, -bound, bound)
        return w, b

    w1, b1 = lin(ks[0], ks[1], 4, 32)
    w2, b2 = lin(ks[2], ks[3], 32, 16)
    w3, b3 = lin(ks[4], ks[5], 16, 3)

    return dict(
        w1=w1, b1=b1,
        g1=jnp.ones((1, 32), jnp.float32), be1=jnp.zeros((1, 32), jnp.float32),
        m1=jnp.zeros((1, 32), jnp.float32), v1=jnp.ones((1, 32), jnp.float32),
        w2=w2, b2=b2,
        g2=jnp.ones((1, 16), jnp.float32), be2=jnp.zeros((1, 16), jnp.float32),
        m2=jnp.zeros((1, 16), jnp.float32), v2=jnp.ones((1, 16), jnp.float32),
        w3=w3, b3=b3,
    )


def irisnet_reference(x, p):
    """Pure-JAX reference (unfused BN, eval mode) for correctness checking."""
    h = x @ p["w1"] + p["b1"]
    h = (h - p["m1"]) / jnp.sqrt(p["v1"] + EPS) * p["g1"] + p["be1"]
    h = jnp.maximum(h, 0.0)
    h = h @ p["w2"] + p["b2"]
    h = (h - p["m2"]) / jnp.sqrt(p["v2"] + EPS) * p["g2"] + p["be2"]
    h = jnp.maximum(h, 0.0)
    return h @ p["w3"] + p["b3"]


if __name__ == "__main__":
    key = jax.random.PRNGKey(0)
    kp, kx1, kx2 = jax.random.split(key, 3)
    params = init_params(kp)

    # Small batch of "iris-like" inputs: (batch=8, features=4), single tile.
    x_small = jax.random.normal(kx1, (8, 4), dtype=jnp.float32)
    out_small = jax.block_until_ready(irisnet_forward(x_small, params))
    ref_small = irisnet_reference(x_small, params)
    assert out_small.shape == (8, 3)
    assert jnp.allclose(out_small, ref_small, atol=1e-4, rtol=1e-4)

    # Larger batch that is NOT a multiple of the tile: exercises the batch
    # grid, tail padding, and the lane-dense (3, B_pad) output path.
    x_big = jax.random.normal(kx2, (1000, 4), dtype=jnp.float32)
    out_big = jax.block_until_ready(irisnet_forward(x_big, params, block_b=256))
    ref_big = irisnet_reference(x_big, params)
    assert out_big.shape == (1000, 3)
    assert jnp.allclose(out_big, ref_big, atol=1e-4, rtol=1e-4)

    print("KERNEL_OK")
</pallas_src>

<mosaic_0001>
module attributes {stable_mosaic.version = 11 : i64} {
  func.func @irisnet_kernel(%arg0: i32, %arg1: memref<8x4xf32, #tpu.memory_space<vmem>>, %arg2: memref<4x32xf32, #tpu.memory_space<vmem>>, %arg3: memref<1x32xf32, #tpu.memory_space<vmem>>, %arg4: memref<32x16xf32, #tpu.memory_space<vmem>>, %arg5: memref<1x16xf32, #tpu.memory_space<vmem>>, %arg6: memref<3x16xf32, #tpu.memory_space<vmem>>, %arg7: memref<3x1xf32, #tpu.memory_space<vmem>>, %arg8: memref<3x8xf32, #tpu.memory_space<vmem>>) attributes {dimension_semantics = [#tpu.dimension_semantics<parallel>], iteration_bounds = array<i64: 1>, scalar_prefetch = 0 : i64, scratch_operands = 0 : i64, tpu.core_type = #tpu.core_type<tc>, window_params = [{transform_indices = @transform_0, window_bounds = array<i64: 8, 4>}, {pipeline_mode = #tpu.pipeline_mode<synchronous>, transform_indices = @transform_1, window_bounds = array<i64: 4, 32>}, {pipeline_mode = #tpu.pipeline_mode<synchronous>, transform_indices = @transform_2, window_bounds = array<i64: 1, 32>}, {pipeline_mode = #tpu.pipeline_mode<synchronous>, transform_indices = @transform_3, window_bounds = array<i64: 32, 16>}, {pipeline_mode = #tpu.pipeline_mode<synchronous>, transform_indices = @transform_4, window_bounds = array<i64: 1, 16>}, {pipeline_mode = #tpu.pipeline_mode<synchronous>, transform_indices = @transform_5, window_bounds = array<i64: 3, 16>}, {pipeline_mode = #tpu.pipeline_mode<synchronous>, transform_indices = @transform_6, window_bounds = array<i64: 3, 1>}, {transform_indices = @transform_7, window_bounds = array<i64: 3, 8>}]} {
    %c0 = arith.constant 0 : index
    %c0_0 = arith.constant 0 : index
    %0 = vector.load %arg1[%c0, %c0_0] : memref<8x4xf32, #tpu.memory_space<vmem>>, vector<8x4xf32>
    %c0_1 = arith.constant 0 : index
    %c0_2 = arith.constant 0 : index
    %1 = vector.load %arg2[%c0_1, %c0_2] : memref<4x32xf32, #tpu.memory_space<vmem>>, vector<4x32xf32>
    %cst = arith.constant dense<0.000000e+00> : vector<8x32xf32>
    %2 = tpu.matmul %0, %1, %cst {dimension_numbers = #tpu.dot_dimension_numbers<[1], [0], [0], [1], [0, 0, 1, 1], [], []>} : vector<8x4xf32>, vector<4x32xf32>, vector<8x32xf32> -> vector<8x32xf32>
    %c0_3 = arith.constant 0 : index
    %c0_4 = arith.constant 0 : index
    %3 = vector.load %arg3[%c0_3, %c0_4] : memref<1x32xf32, #tpu.memory_space<vmem>>, vector<1x32xf32>
    %4 = vector.broadcast %3 : vector<1x32xf32> to vector<8x32xf32>
    %5 = arith.addf %2, %4 : vector<8x32xf32>
    %cst_5 = arith.constant 0.000000e+00 : f32
    %6 = vector.broadcast %cst_5 : f32 to vector<8x32xf32>
    %7 = arith.maximumf %5, %6 : vector<8x32xf32>
    %c0_6 = arith.constant 0 : index
    %c0_7 = arith.constant 0 : index
    %8 = vector.load %arg4[%c0_6, %c0_7] : memref<32x16xf32, #tpu.memory_space<vmem>>, vector<32x16xf32>
    %cst_8 = arith.constant dense<0.000000e+00> : vector<8x16xf32>
    %9 = tpu.matmul %7, %8, %cst_8 {dimension_numbers = #tpu.dot_dimension_numbers<[1], [0], [0], [1], [0, 0, 1, 1], [], []>} : vector<8x32xf32>, vector<32x16xf32>, vector<8x16xf32> -> vector<8x16xf32>
    %c0_9 = arith.constant 0 : index
    %c0_10 = arith.constant 0 : index
    %10 = vector.load %arg5[%c0_9, %c0_10] : memref<1x16xf32, #tpu.memory_space<vmem>>, vector<1x16xf32>
    %11 = vector.broadcast %10 : vector<1x16xf32> to vector<8x16xf32>
    %12 = arith.addf %9, %11 : vector<8x16xf32>
    %cst_11 = arith.constant 0.000000e+00 : f32
    %13 = vector.broadcast %cst_11 : f32 to vector<8x16xf32>
    %14 = arith.maximumf %12, %13 : vector<8x16xf32>
    %c0_12 = arith.constant 0 : index
    %c0_13 = arith.constant 0 : index
    %15 = vector.load %arg6[%c0_12, %c0_13] : memref<3x16xf32, #tpu.memory_space<vmem>>, vector<3x16xf32>
    %cst_14 = arith.constant dense<0.000000e+00> : vector<3x8xf32>
    %16 = tpu.matmul %15, %14, %cst_14 {dimension_numbers = #tpu.dot_dimension_numbers<[1], [1], [0], [0], [0, 0, 1, 0], [], []>} : vector<3x16xf32>, vector<8x16xf32>, vector<3x8xf32> -> vector<3x8xf32>
    %c0_15 = arith.constant 0 : index
    %c0_16 = arith.constant 0 : index
    %17 = vector.load %arg7[%c0_15, %c0_16] : memref<3x1xf32, #tpu.memory_space<vmem>>, vector<3x1xf32>
    %18 = vector.broadcast %17 : vector<3x1xf32> to vector<3x8xf32>
    %19 = arith.addf %16, %18 : vector<3x8xf32>
    %c0_17 = arith.constant 0 : index
    %c0_18 = arith.constant 0 : index
    %20 = vector.load %arg8[%c0_17, %c0_18] : memref<3x8xf32, #tpu.memory_space<vmem>>, vector<3x8xf32>
    tpu.vector_store %arg8[%c0_17, %c0_18], %19 {strides = array<i32>} : memref<3x8xf32, #tpu.memory_space<vmem>>, vector<3x8xf32>,
    return
  }
  func.func @transform_0(%arg0: i32) -> (i32, i32) {
    %c0_i32 = arith.constant 0 : i32
    %c0_i32_0 = arith.constant 0 : i32
    return %arg0, %c0_i32 : i32, i32
  }
  func.func @transform_1(%arg0: i32) -> (i32, i32) {
    %c0_i32 = arith.constant 0 : i32
    %c0_i32_0 = arith.constant 0 : i32
    %c0_i32_1 = arith.constant 0 : i32
    return %c0_i32, %c0_i32_0 : i32, i32
  }
  func.func @transform_2(%arg0: i32) -> (i32, i32) {
    %c0_i32 = arith.constant 0 : i32
    %c0_i32_0 = arith.constant 0 : i32
    %c0_i32_1 = arith.constant 0 : i32
    return %c0_i32, %c0_i32_0 : i32, i32
  }
  func.func @transform_3(%arg0: i32) -> (i32, i32) {
    %c0_i32 = arith.constant 0 : i32
    %c0_i32_0 = arith.constant 0 : i32
    %c0_i32_1 = arith.constant 0 : i32
    return %c0_i32, %c0_i32_0 : i32, i32
  }
  func.func @transform_4(%arg0: i32) -> (i32, i32) {
    %c0_i32 = arith.constant 0 : i32
    %c0_i32_0 = arith.constant 0 : i32
    %c0_i32_1 = arith.constant 0 : i32
    return %c0_i32, %c0_i32_0 : i32, i32
  }
  func.func @transform_5(%arg0: i32) -> (i32, i32) {
    %c0_i32 = arith.constant 0 : i32
    %c0_i32_0 = arith.constant 0 : i32
    %c0_i32_1 = arith.constant 0 : i32
    return %c0_i32, %c0_i32_0 : i32, i32
  }
  func.func @transform_6(%arg0: i32) -> (i32, i32) {
    %c0_i32 = arith.constant 0 : i32
    %c0_i32_0 = arith.constant 0 : i32
    %c0_i32_1 = arith.constant 0 : i32
    return %c0_i32, %c0_i32_0 : i32, i32
  }
  func.func @transform_7(%arg0: i32) -> (i32, i32) {
    %c0_i32 = arith.constant 0 : i32
    %c0_i32_0 = arith.constant 0 : i32
    return %c0_i32, %arg0 : i32, i32
  }
}

</mosaic_0001>

<bundles_post_ra>
// kernel: tpu_custom_call.1
= control target key start
LH: loop header
LB: loop body
LE: loop exit
PB: predicated region body
PF: predicated region fallthrough
CT: control target
= control target key end

     0   :  { %vm40_vm0 = vcmask 1043456   ;;  %v374_v2 = vmov 0.0   ;;  %vm375_vm1 = vmmov 0   ;;  %vm36_vm2 = vcmask 31744   ;;  %s461_s0 = inlined_call_operand.vmem [shape: f32[8,4], index: 0, kind: input, shape index: {}]   ;;  %s462_s1 = inlined_call_operand.vmem [shape: f32[4,32], index: 1, kind: input, shape index: {}]   ;;  %s463_s2 = inlined_call_operand.vmem [shape: f32[1,32], index: 2, kind: input, shape index: {}]   ;;  %s464_s3 = inlined_call_operand.vmem [shape: f32[32,16], index: 3, kind: input, shape index: {}]   ;;  %s465_s4 = inlined_call_operand.vmem [shape: f32[1,16], index: 4, kind: input, shape index: {}]   ;;  %s466_s5 = inlined_call_operand.vmem [shape: f32[3,16], index: 5, kind: input, shape index: {}]   ;;  %s467_s6 = inlined_call_operand.vmem [shape: f32[3,1], index: 6, kind: input, shape index: {}]   ;;  %s468_s7 = inlined_call_operand.hbm [shape: f32[3,8], index: 7, kind: output, shape index: {}]  }
   0x1   :  { %v28_v0 = vld [vmem:[%s462_s1] sm:$0xf]  ;;  %317 = vmatprep.subr.mxu0 %v374_v2  ;;  %319 = vmatprep.mubr.msk.f32.mxu0 %vm375_vm1, %v374_v2  ;;  %v116_v4 = vld [vmem:[%s464_s3 + $0x8] sm:$0xff]  ;;  %v376_v5 = vmov 0.0|0.0  }
   0x2   :  { %v27_v1 = vld [vmem:[%s461_s0] sm:$0xff]  ;;  %318 = vmatpush3.msk.msra.mxu0 %vm40_vm0, %v28_v0  ;;  %338 = vmatprep.subr.bf16.mxu1 %v376_v5 }
   0x3   :  { %v115_v3 = vld [vmem:[%s464_s3] sm:$0xff] }
   0x4   :  { %v339_v6 = vpack.c.bf16 %v116_v4, %v115_v3 }
   0x5   :  { %12 = vsyncpa [#allocation3], 0  ;;  %320 = vmatmul.mubr.msk.f32.vlgmr.msra.gmra.mrb[0].mxu0 %vm36_vm2, %v27_v1  ;;  %330 = vmatprep.mubr.msk.f32.mxu1 %vm375_vm1, %v374_v2  ;;  %v117_v7 = vld [vmem:[%s464_s3 + $0x10] sm:$0xff]  ;;  %v118_v8 = vld [vmem:[%s464_s3 + $0x18] sm:$0xff]  ;;  %vm126_vm3 = vcmask 261120   ;;  %v377_v16 = vmov 0  }
   0x6   :  { %340 = vmatpush3.bf16.msra.mxu1 %v339_v6  ;;  %333 = vmatprep.subr.mxu0 %v374_v2  ;;  %v342_v9 = vpack.c.bf16 %v118_v8, %v117_v7  ;;  %v301_v10 = vld [vmem:[%s463_s2] ss:$0 sm:$0xff]  ;;  %vm208_vm4 = vcmask 130048   ;;  %vm285_vm5 = vcmask 59392  }
   0x7   :  { %341 = vmatprep.subr.bf16.mxu1 %v376_v5  ;;  %335 = vmatprep.mubr.msk.f32.mxu0 %vm375_vm1, %v374_v2  ;;  %v202_v15 = vld [vmem:[%s467_s6] sm:$0x7]  ;;  %s378_s6 = smov [#allocation2]  }
   0x8   :  { %349 = vset.pattern.permute.xlu0 %v377_v16  ;;  %v304_v17 = vld [vmem:[%s465_s4] ss:$0 sm:$0xff]  ;;  %s293_s17 = sshll.u32 %s378_s6, 4  ;;  %s294_s17 = int_to_ptr.vmem [resolvable:$true] %s293_s17 }
   0x9   :  { %205 = vperm.xlu0 %349, %v202_v15   ;;  %v201_v22 = vld [vmem:[%s466_s5] sm:$0x7]  ;;  %s350_s4 = scalar_lea.vmem %s294_s17, 64  ;;  %p355_p1 = scmp.lt.s32.totalorder %s294_s17, %s294_s17 }
   0xa   :  { %343 = vmatpush3.bf16.msra.mxu1 %v342_v9  ;;  %p351_p0 = scmp.ne.s32.totalorder %s294_s17, %s350_s4  ;;  %p356_p2 = scmp.lt.s32.totalorder %s350_s4, %s350_s4 }
   0xc   :  { %p357_p3 = por %p356_p2, %p355_p1 }
   0xe   :  { %p358_p4 = pnand %p357_p3, %p351_p0 }
  0x88   :  { %v206_v23 = vpop.permute.xlu0 %205 }
  0xd8   :  { %v110_v11 = vpop.f32.mrb[0].mxu0 }
  0xd9   :  { %v111_v12 = vadd.f32 %v301_v10, %v110_v11  ;;  %v321_v13 = vpop.f32.mrb[1].mxu0 }
  0xdb   :  { %v114_v14 = vmax.f32 %v111_v12, 0.0 }
  0xdd   :  { %331 = vmatmul.mubr.msk.f32.vlgmr.msra.gmra.mrb[0].mxu1 %vm126_vm3, %v114_v14 }
 0x1b0   :  { %v196_v18 = vpop.f32.mrb[0].mxu1 }
 0x1b1   :  { %v197_v19 = vadd.f32 %v304_v17, %v196_v18  ;;  %v332_v20 = vpop.f32.mrb[1].mxu1 }
 0x1b3   :  { %v200_v21 = vmax.f32 %v197_v19, 0.0 }
 0x1b5   :  { %334 = vmatpush3.xpose.msk.msra.mxu0 %vm208_vm4, %v200_v21 }
 0x1b8   :  { %336 = vmatmul.mubr.msk.f32.vlgmr.msra.gmra.mrb[2].mxu0 %vm208_vm4, %v201_v22 }
 0x28b   :  { %v281_v24 = vpop.f32.mrb[2].mxu0 }
 0x28c   :  { %v282_v25 = vadd.f32 %v281_v24, %v206_v23  ;;  %v337_v26 = vpop.f32.mrb[3].mxu0 }
 0x28e   :  { %286 = vst.msk [vmem:[#allocation2] sm:$0x7] %vm285_vm5, %v282_v25 }
 0x28f   :  { %361 = shalt.err (!%p358_p4)
}
 0x290   :  { %s362_s5 = scalar_lea.hbm %s468_s7, 64 }
 0x291   :  { %p363_p5 = scmp.ne.s32.totalorder %s468_s7, %s362_s5  ;;  %p366_p6 = scmp.lt.u32.totalorder %s362_s5, %s468_s7 }
 0x293   :  { %p368_p7 = pnand %p366_p6, %p363_p5 }
 0x295   :  { %371 = shalt.err (!%p368_p7)
}
 0x296   :  { %296 = dma.vmem_to_hbm [thread:$0]  %s294_s17, 64, %s468_s7, [#allocation3]  }
 0x297   :  { %372 = dma.done.wait [#allocation3], 64  }
 0x298   :  { %373 = vsyncadd [#allocation3], 4294967232 }
 0x299   :  { %300 = vsyncpa [#allocation3], 1 }

</bundles_post_ra>
